<compile_context>
chip_gen: v7x
topology: tpu7x:2x2x1
jax: 0.10.0
libtpu: 0.0.40
codegen_flags: <defaults>
</compile_context>

<pallas_src>
import jax
import jax.numpy as jnp
from jax.experimental import pallas as pl
from jax.experimental.pallas import tpu as pltpu


def _round_up(x, m):
    return (x + m - 1) // m * m


def sae_kernel(sigma_ref,                         # SMEM scalar [1]
               x_ref, wenc_ref, benc_ref, noise_ref,
               wdec_ref, bdec_ref,                # fused decoder weight / bias
               hid_ref, out_ref,                  # outputs
               acc_ref):                          # f32 VMEM accumulator scratch
    j = pl.program_id(1)
    sigma = sigma_ref[0]

    # ---- Encoder tile: relu(x @ Wenc[:, tile_j] + benc[tile_j]) + sigma*noise ----
    pre = jnp.dot(x_ref[...], wenc_ref[...], preferred_element_type=jnp.float32)
    h = jnp.maximum(pre + benc_ref[...], 0.0) + sigma * noise_ref[...]
    hid_ref[...] = h.astype(hid_ref.dtype)

    # ---- Fused decoder: acc += h @ [Wdec | Wdec2], accumulated over hidden tiles ----
    @pl.when(j == 0)
    def _init():
        acc_ref[...] = jnp.broadcast_to(
            bdec_ref[...].astype(jnp.float32), acc_ref.shape)

    acc_ref[...] += jnp.dot(h.astype(wdec_ref.dtype), wdec_ref[...],
                            preferred_element_type=jnp.float32)

    @pl.when(j == pl.num_programs(1) - 1)
    def _finalize():
        out_ref[...] = acc_ref[...].astype(out_ref.dtype)


def sparse_autoencoder_forward(x, params, noise, sigma_noise, *,
                               matmul_dtype=jnp.float32,
                               block_b=None, block_h=None,
                               vmem_budget_bytes=40 * 1024 * 1024):
    """x: [B, n_inp] f32. noise: [B, n_hidden] f32. Returns (x_rec, x_hidden, x2)."""
    B, n_inp = x.shape
    n_hidden = params["wenc"].shape[1]
    n_out = n_inp + 2                      # fused decoder output width (xrec | x2)

    # ---- Lane-dense padded sizes ----
    n_inp_p = _round_up(n_inp, 128)
    n_out_p = _round_up(n_out, 128)

    itemsize = max(jnp.dtype(matmul_dtype).itemsize, 4)

    # ---- Tile sizes (batch sublane-aligned, hidden lane-aligned), VMEM-budgeted ----
    tb = block_b if block_b is not None else min(_round_up(B, 8), 256)
    tb = max(8, _round_up(tb, 8))
    th = block_h if block_h is not None else min(_round_up(n_hidden, 128), 512)
    th = max(128, _round_up(th, 128))

    def _vmem_bytes(tb_, th_):
        per_iter = ((tb_ * n_inp_p) + (n_inp_p * th_) + th_ + (tb_ * th_)
                    + (th_ * n_out_p) + n_out_p
                    + (tb_ * th_) + (tb_ * n_out_p)) * itemsize
        return 2 * per_iter + tb_ * n_out_p * 4        # double-buffered + acc

    while th > 128 and _vmem_bytes(tb, th) > vmem_budget_bytes:
        th -= 128
    while tb > 8 and _vmem_bytes(tb, th) > vmem_budget_bytes:
        tb -= 8

    B_p = _round_up(B, tb)
    n_hidden_p = _round_up(n_hidden, th)

    # ---- Zero-pad operands (padded lanes contribute exactly zero) ----
    f32 = jnp.float32

    def pad2(a, rows, cols):
        return jnp.pad(a, ((0, rows - a.shape[0]), (0, cols - a.shape[1])))

    x_p = pad2(x.astype(f32), B_p, n_inp_p).astype(matmul_dtype)
    noise_p = pad2(noise.astype(f32), B_p, n_hidden_p)
    wenc_p = pad2(params["wenc"].astype(f32), n_inp_p, n_hidden_p).astype(matmul_dtype)
    benc_p = pad2(params["benc"].astype(f32).reshape(1, -1), 1, n_hidden_p)

    # Fuse the two decoders into one lane-dense [n_hidden_p, n_out_p] matmul.
    wdec_fused = jnp.concatenate(
        [params["wdec"].astype(f32), params["wdec2"].astype(f32)], axis=1)
    bdec_fused = jnp.concatenate(
        [params["bdec"].astype(f32).reshape(1, -1),
         params["bdec2"].astype(f32).reshape(1, -1)], axis=1)
    wdec_p = pad2(wdec_fused, n_hidden_p, n_out_p).astype(matmul_dtype)
    bdec_p = pad2(bdec_fused, 1, n_out_p)

    sigma = jnp.asarray([sigma_noise], dtype=f32)

    grid = (B_p // tb, n_hidden_p // th)

    smem_spec = pl.BlockSpec(memory_space=pltpu.MemorySpace.SMEM)
    in_specs = [
        smem_spec,                                              # sigma scalar
        pl.BlockSpec((tb, n_inp_p),  lambda i, j: (i, 0)),      # x
        pl.BlockSpec((n_inp_p, th),  lambda i, j: (0, j)),      # Wenc
        pl.BlockSpec((1, th),        lambda i, j: (0, j)),      # benc
        pl.BlockSpec((tb, th),       lambda i, j: (i, j)),      # noise
        pl.BlockSpec((th, n_out_p),  lambda i, j: (j, 0)),      # Wdec fused
        pl.BlockSpec((1, n_out_p),   lambda i, j: (0, 0)),      # bdec fused
    ]
    out_specs = (
        pl.BlockSpec((tb, th),       lambda i, j: (i, j)),      # hidden
        pl.BlockSpec((tb, n_out_p),  lambda i, j: (i, 0)),      # fused decoder output
    )
    out_shapes = (
        jax.ShapeDtypeStruct((B_p, n_hidden_p), f32),
        jax.ShapeDtypeStruct((B_p, n_out_p), f32),
    )

    w_itemsize = jnp.dtype(matmul_dtype).itemsize
    flops = 2 * B_p * n_inp_p * n_hidden_p + 2 * B_p * n_hidden_p * n_out_p
    bytes_accessed = (
        (B_p * n_inp_p + n_inp_p * n_hidden_p + n_hidden_p * n_out_p) * w_itemsize
        + (B_p * n_hidden_p + n_hidden_p + n_out_p) * 4            # noise + biases
        + (B_p * n_hidden_p + B_p * n_out_p) * 4)                  # outputs

    hid_p, out_p = pl.pallas_call(
        sae_kernel,
        out_shape=out_shapes,
        grid_spec=pltpu.PrefetchScalarGridSpec(
            num_scalar_prefetch=0,
            grid=grid,
            in_specs=in_specs,
            out_specs=out_specs,
            scratch_shapes=[pltpu.VMEM((tb, n_out_p), jnp.float32)],
        ),
        compiler_params=pltpu.CompilerParams(
            dimension_semantics=("parallel", "arbitrary"),
            vmem_limit_bytes=56 * 1024 * 1024,
        ),
        cost_estimate=pl.CostEstimate(
            flops=flops, transcendentals=0, bytes_accessed=bytes_accessed),
    )(sigma, x_p, wenc_p, benc_p, noise_p, wdec_p, bdec_p)

    x_rec = out_p[:B, :n_inp]
    x2 = out_p[:B, n_inp:n_inp + 2]
    x_hidden = hid_p[:B, :n_hidden]
    return x_rec, x_hidden, x2


def init_params(key, n_inp, n_hidden, sigma_init):
    """Deterministic init matching _init_weights: N(0, sigma_init) for W and b."""
    ks = jax.random.split(key, 6)
    # Stored already in [in, out] layout for the kernel.
    wenc = sigma_init * jax.random.normal(ks[0], (n_inp, n_hidden), jnp.float32)
    benc = sigma_init * jax.random.normal(ks[1], (1, n_hidden), jnp.float32)
    wdec = sigma_init * jax.random.normal(ks[2], (n_hidden, n_inp), jnp.float32)
    bdec = sigma_init * jax.random.normal(ks[3], (1, n_inp), jnp.float32)
    wdec2 = sigma_init * jax.random.normal(ks[4], (n_hidden, 2), jnp.float32)
    bdec2 = sigma_init * jax.random.normal(ks[5], (1, 2), jnp.float32)
    return dict(wenc=wenc, benc=benc, wdec=wdec, bdec=bdec,
                wdec2=wdec2, bdec2=bdec2)


if __name__ == "__main__":
    # Small shapes consistent with the module's forward.
    B, n_inp, n_hidden = 8, 32, 64
    sigma_init = 0.1
    sigma_noise = 0.05

    key = jax.random.PRNGKey(0)
    k_params, k_x, k_noise = jax.random.split(key, 3)

    params = init_params(k_params, n_inp, n_hidden, sigma_init)
    x = jax.random.normal(k_x, (B, n_inp), jnp.float32)
    # TODO(synk): noise is drawn host-side (torch.randn equivalent); an in-kernel
    # pltpu.prng_* draw would avoid the HBM read but changes the RNG stream.
    noise = jax.random.normal(k_noise, (B, n_hidden), jnp.float32)

    x_rec, x_hidden, x2 = sparse_autoencoder_forward(x, params, noise, sigma_noise)
    jax.block_until_ready((x_rec, x_hidden, x2))

    # Reference check in plain JAX.
    h_ref = jnp.maximum(x @ params["wenc"] + params["benc"], 0.0) + sigma_noise * noise
    xr_ref = h_ref @ params["wdec"] + params["bdec"]
    x2_ref = h_ref @ params["wdec2"] + params["bdec2"]
    assert jnp.allclose(x_hidden, h_ref, atol=1e-5)
    assert jnp.allclose(x_rec, xr_ref, atol=1e-5)
    assert jnp.allclose(x2, x2_ref, atol=1e-5)
    assert x_rec.shape == (B, n_inp) and x_hidden.shape == (B, n_hidden) and x2.shape == (B, 2)

    print("KERNEL_OK")
</pallas_src>

<mosaic_0001>
module attributes {stable_mosaic.version = 11 : i64} {
  func.func @sae_kernel(%arg0: i32, %arg1: i32, %arg2: memref<1xf32, #tpu.memory_space<smem>>, %arg3: memref<8x128xf32, #tpu.memory_space<vmem>>, %arg4: memref<128x128xf32, #tpu.memory_space<vmem>>, %arg5: memref<1x128xf32, #tpu.memory_space<vmem>>, %arg6: memref<8x128xf32, #tpu.memory_space<vmem>>, %arg7: memref<128x128xf32, #tpu.memory_space<vmem>>, %arg8: memref<1x128xf32, #tpu.memory_space<vmem>>, %arg9: memref<8x128xf32, #tpu.memory_space<vmem>>, %arg10: memref<8x128xf32, #tpu.memory_space<vmem>>, %arg11: memref<8x128xf32, #tpu.memory_space<vmem>>) attributes {dimension_semantics = [#tpu.dimension_semantics<parallel>, #tpu.dimension_semantics<arbitrary>], iteration_bounds = array<i64: 1, 1>, scalar_prefetch = 0 : i64, scratch_operands = 1 : i64, tpu.core_type = #tpu.core_type<tc>, window_params = [{transform_indices = @transform_0, window_bounds = array<i64: 1>}, {transform_indices = @transform_1, window_bounds = array<i64: 8, 128>}, {transform_indices = @transform_2, window_bounds = array<i64: 128, 128>}, {transform_indices = @transform_3, window_bounds = array<i64: 1, 128>}, {transform_indices = @transform_4, window_bounds = array<i64: 8, 128>}, {transform_indices = @transform_5, window_bounds = array<i64: 128, 128>}, {pipeline_mode = #tpu.pipeline_mode<synchronous>, transform_indices = @transform_6, window_bounds = array<i64: 1, 128>}, {transform_indices = @transform_7, window_bounds = array<i64: 8, 128>}, {transform_indices = @transform_8, window_bounds = array<i64: 8, 128>}]} {
    %c0 = arith.constant 0 : index
    %0 = memref.load %arg2[%c0] : memref<1xf32, #tpu.memory_space<smem>>
    %c0_0 = arith.constant 0 : index
    %c0_1 = arith.constant 0 : index
    %1 = vector.load %arg3[%c0_0, %c0_1] : memref<8x128xf32, #tpu.memory_space<vmem>>, vector<8x128xf32>
    %c0_2 = arith.constant 0 : index
    %c0_3 = arith.constant 0 : index
    %2 = vector.load %arg4[%c0_2, %c0_3] : memref<128x128xf32, #tpu.memory_space<vmem>>, vector<128x128xf32>
    %cst = arith.constant dense<0.000000e+00> : vector<8x128xf32>
    %3 = tpu.matmul %1, %2, %cst {dimension_numbers = #tpu.dot_dimension_numbers<[1], [0], [0], [1], [0, 0, 1, 1], [], []>} : vector<8x128xf32>, vector<128x128xf32>, vector<8x128xf32> -> vector<8x128xf32>
    %c0_4 = arith.constant 0 : index
    %c0_5 = arith.constant 0 : index
    %4 = vector.load %arg5[%c0_4, %c0_5] : memref<1x128xf32, #tpu.memory_space<vmem>>, vector<1x128xf32>
    %5 = vector.broadcast %4 : vector<1x128xf32> to vector<8x128xf32>
    %6 = arith.addf %3, %5 : vector<8x128xf32>
    %cst_6 = arith.constant 0.000000e+00 : f32
    %7 = vector.broadcast %cst_6 : f32 to vector<8x128xf32>
    %8 = arith.maximumf %6, %7 : vector<8x128xf32>
    %c0_7 = arith.constant 0 : index
    %c0_8 = arith.constant 0 : index
    %9 = vector.load %arg6[%c0_7, %c0_8] : memref<8x128xf32, #tpu.memory_space<vmem>>, vector<8x128xf32>
    %10 = vector.broadcast %0 : f32 to vector<8x128xf32>
    %11 = arith.mulf %10, %9 : vector<8x128xf32>
    %12 = arith.addf %8, %11 : vector<8x128xf32>
    %c0_9 = arith.constant 0 : index
    %c0_10 = arith.constant 0 : index
    %13 = vector.load %arg9[%c0_9, %c0_10] : memref<8x128xf32, #tpu.memory_space<vmem>>, vector<8x128xf32>
    tpu.vector_store %arg9[%c0_9, %c0_10], %12 {strides = array<i32>} : memref<8x128xf32, #tpu.memory_space<vmem>>, vector<8x128xf32>,
    %c0_i32 = arith.constant 0 : i32
    %14 = arith.cmpi eq, %arg1, %c0_i32 : i32
    %15 = arith.extui %14 : i1 to i32
    %c0_i32_11 = arith.constant 0 : i32
    %16 = arith.cmpi ne, %15, %c0_i32_11 : i32
    scf.if %16 {
      %c0_21 = arith.constant 0 : index
      %c0_22 = arith.constant 0 : index
      %25 = vector.load %arg8[%c0_21, %c0_22] : memref<1x128xf32, #tpu.memory_space<vmem>>, vector<1x128xf32>
      %26 = vector.shape_cast %25 : vector<1x128xf32> to vector<1x128xf32>
      %27 = vector.broadcast %26 : vector<1x128xf32> to vector<8x128xf32>
      %c0_23 = arith.constant 0 : index
      %c0_24 = arith.constant 0 : index
      %28 = vector.load %arg11[%c0_23, %c0_24] : memref<8x128xf32, #tpu.memory_space<vmem>>, vector<8x128xf32>
      tpu.vector_store %arg11[%c0_23, %c0_24], %27 {strides = array<i32>} : memref<8x128xf32, #tpu.memory_space<vmem>>, vector<8x128xf32>,
    } else {
    }
    %c0_12 = arith.constant 0 : index
    %c0_13 = arith.constant 0 : index
    %17 = vector.load %arg11[%c0_12, %c0_13] : memref<8x128xf32, #tpu.memory_space<vmem>>, vector<8x128xf32>
    %c0_14 = arith.constant 0 : index
    %c0_15 = arith.constant 0 : index
    %18 = vector.load %arg7[%c0_14, %c0_15] : memref<128x128xf32, #tpu.memory_space<vmem>>, vector<128x128xf32>
    %cst_16 = arith.constant dense<0.000000e+00> : vector<8x128xf32>
    %19 = tpu.matmul %12, %18, %cst_16 {dimension_numbers = #tpu.dot_dimension_numbers<[1], [0], [0], [1], [0, 0, 1, 1], [], []>} : vector<8x128xf32>, vector<128x128xf32>, vector<8x128xf32> -> vector<8x128xf32>
    %20 = arith.addf %17, %19 : vector<8x128xf32>
    %c0_17 = arith.constant 0 : index
    %c0_18 = arith.constant 0 : index
    %21 = vector.load %arg11[%c0_17, %c0_18] : memref<8x128xf32, #tpu.memory_space<vmem>>, vector<8x128xf32>
    tpu.vector_store %arg11[%c0_17, %c0_18], %20 {strides = array<i32>} : memref<8x128xf32, #tpu.memory_space<vmem>>, vector<8x128xf32>,
    %c0_i32_19 = arith.constant 0 : i32
    %22 = arith.cmpi eq, %arg1, %c0_i32_19 : i32
    %23 = arith.extui %22 : i1 to i32
    %c0_i32_20 = arith.constant 0 : i32
    %24 = arith.cmpi ne, %23, %c0_i32_20 : i32
    scf.if %24 {
      %c0_21 = arith.constant 0 : index
      %c0_22 = arith.constant 0 : index
      %25 = vector.load %arg11[%c0_21, %c0_22] : memref<8x128xf32, #tpu.memory_space<vmem>>, vector<8x128xf32>
      %c0_23 = arith.constant 0 : index
      %c0_24 = arith.constant 0 : index
      %26 = vector.load %arg10[%c0_23, %c0_24] : memref<8x128xf32, #tpu.memory_space<vmem>>, vector<8x128xf32>
      tpu.vector_store %arg10[%c0_23, %c0_24], %25 {strides = array<i32>} : memref<8x128xf32, #tpu.memory_space<vmem>>, vector<8x128xf32>,
    } else {
    }
    return
  }
  func.func @transform_0(%arg0: i32, %arg1: i32) -> i32 {
    %c0_i32 = arith.constant 0 : i32
    %c0_i32_0 = arith.constant 0 : i32
    return %c0_i32 : i32
  }
  func.func @transform_1(%arg0: i32, %arg1: i32) -> (i32, i32) {
    %c0_i32 = arith.constant 0 : i32
    %c0_i32_0 = arith.constant 0 : i32
    return %arg0, %c0_i32 : i32, i32
  }
  func.func @transform_2(%arg0: i32, %arg1: i32) -> (i32, i32) {
    %c0_i32 = arith.constant 0 : i32
    %c0_i32_0 = arith.constant 0 : i32
    return %c0_i32, %arg1 : i32, i32
  }
  func.func @transform_3(%arg0: i32, %arg1: i32) -> (i32, i32) {
    %c0_i32 = arith.constant 0 : i32
    %c0_i32_0 = arith.constant 0 : i32
    return %c0_i32, %arg1 : i32, i32
  }
  func.func @transform_4(%arg0: i32, %arg1: i32) -> (i32, i32) {
    %c0_i32 = arith.constant 0 : i32
    return %arg0, %arg1 : i32, i32
  }
  func.func @transform_5(%arg0: i32, %arg1: i32) -> (i32, i32) {
    %c0_i32 = arith.constant 0 : i32
    %c0_i32_0 = arith.constant 0 : i32
    return %arg1, %c0_i32 : i32, i32
  }
  func.func @transform_6(%arg0: i32, %arg1: i32) -> (i32, i32) {
    %c0_i32 = arith.constant 0 : i32
    %c0_i32_0 = arith.constant 0 : i32
    %c0_i32_1 = arith.constant 0 : i32
    return %c0_i32, %c0_i32_0 : i32, i32
  }
  func.func @transform_7(%arg0: i32, %arg1: i32) -> (i32, i32) {
    %c0_i32 = arith.constant 0 : i32
    return %arg0, %arg1 : i32, i32
  }
  func.func @transform_8(%arg0: i32, %arg1: i32) -> (i32, i32) {
    %c0_i32 = arith.constant 0 : i32
    %c0_i32_0 = arith.constant 0 : i32
    return %arg0, %c0_i32 : i32, i32
  }
}

</mosaic_0001>

<bundles_post_ra>
// kernel: tpu_custom_call.1
= control target key start
LH: loop header
LB: loop body
LE: loop exit
PB: predicated region body
PF: predicated region fallthrough
CT: control target
= control target key end

     0   :  { %15 = vsyncpa [#allocation5], 0  ;;  %s738_s0 = inlined_call_operand.<no memory space> [shape: f32[1], index: 0, kind: input, shape index: {}]   ;;  %s739_s1 = inlined_call_operand.hbm [shape: f32[8,128], index: 1, kind: input, shape index: {}]   ;;  %s740_s2 = inlined_call_operand.hbm [shape: f32[128,128], index: 2, kind: input, shape index: {}]   ;;  %s741_s3 = inlined_call_operand.vmem [shape: f32[1,128], index: 3, kind: input, shape index: {}]   ;;  %s742_s4 = inlined_call_operand.vmem [shape: f32[8,128], index: 4, kind: input, shape index: {}]   ;;  %s743_s5 = inlined_call_operand.hbm [shape: f32[128,128], index: 5, kind: input, shape index: {}]   ;;  %s744_s6 = inlined_call_operand.vmem [shape: f32[1,128], index: 6, kind: input, shape index: {}]   ;;  %s745_s7 = inlined_call_operand.hbm [shape: f32[8,128], index: 7, kind: output, shape index: {0}]   ;;  %s746_s8 = inlined_call_operand.hbm [shape: f32[8,128], index: 8, kind: output, shape index: {1}]  }
   0x1   :  { %16 = vsyncpa [#allocation8], 0 }
   0x2   :  { %17 = vsyncpa [#allocation6], 0 }
   0x3   :  { %18 = vsyncpa [#allocation12], 0  ;;  %s589_s27 = smov [#allocation7]   ;;  %s471_s9 = scalar_lea.hbm %s740_s2, 2048 }
   0x4   :  { %s36_s28 = sshll.u32 %s589_s27, 4  ;;  %p472_p0 = scmp.ne.s32.totalorder %s740_s2, %s471_s9  ;;  %s37_s28 = int_to_ptr.vmem [resolvable:$true] %s36_s28 }
   0x5   :  { %p475_p1 = scmp.lt.u32.totalorder %s471_s9, %s740_s2 }
   0x7   :  { %p477_p2 = pnand %p475_p1, %p472_p0 }
   0x9   :  { %480 = shalt.err (!%p477_p2)
}
   0xa   :  { %s481_s14 = scalar_lea.vmem %s37_s28, 2048  ;;  %p486_p4 = scmp.lt.s32.totalorder %s37_s28, %s37_s28 }
   0xb   :  { %p482_p3 = scmp.ne.s32.totalorder %s37_s28, %s481_s14  ;;  %p487_p5 = scmp.lt.s32.totalorder %s481_s14, %s481_s14 }
   0xd   :  { %p488_p6 = por %p487_p5, %p486_p4 }
   0xf   :  { %p489_p7 = pnand %p488_p6, %p482_p3 }
  0x11   :  { %492 = shalt.err (!%p489_p7)
}
  0x12   :  { %s590_s15 = smov 128   ;;  %s591_s16 = smov 8  }
  0x13   :  { %42 = dma.hbm_to_vmem [thread:$0]  %s740_s2, 2048, %s37_s28, [#allocation8], %s590_s15, %s590_s15, %s591_s16  }
  0x14   :  { %s592_s19 = smov [#allocation4]   ;;  %s593_s21 = smov [#allocation9]  }
  0x15   :  { %s27_s20 = sshll.u32 %s592_s19, 4  ;;  %s52_s22 = sshll.u32 %s593_s21, 4  ;;  %s28_s20 = int_to_ptr.vmem [resolvable:$true] %s27_s20  ;;  %s53_s22 = int_to_ptr.vmem [resolvable:$true] %s52_s22 }
  0x16   :  { %s493_s25 = scalar_lea.hbm %s739_s1, 128 }
  0x17   :  { %p494_p8 = scmp.ne.s32.totalorder %s739_s1, %s493_s25  ;;  %p497_p9 = scmp.lt.u32.totalorder %s493_s25, %s739_s1 }
  0x19   :  { %p499_p10 = pnand %p497_p9, %p494_p8 }
  0x1b   :  { %502 = shalt.err (!%p499_p10)
}
  0x1c   :  { %s503_s2 = scalar_lea.vmem %s28_s20, 128  ;;  %p508_p12 = scmp.lt.s32.totalorder %s28_s20, %s28_s20 }
  0x1d   :  { %p504_p11 = scmp.ne.s32.totalorder %s28_s20, %s503_s2  ;;  %p509_p13 = scmp.lt.s32.totalorder %s503_s2, %s503_s2 }
  0x1f   :  { %p510_p0 = por %p509_p13, %p508_p12 }
  0x21   :  { %p511_p1 = pnand %p510_p0, %p504_p11 }
  0x23   :  { %514 = shalt.err (!%p511_p1)
}
  0x24   :  { %30 = dma.hbm_to_vmem [thread:$0]  %s739_s1, 128, %s28_s20, [#allocation5]  }
  0x25   :  { %s515_s12 = scalar_lea.hbm %s743_s5, 2048 }
  0x26   :  { %p516_p2 = scmp.ne.s32.totalorder %s743_s5, %s515_s12  ;;  %p519_p3 = scmp.lt.u32.totalorder %s515_s12, %s743_s5 }
  0x28   :  { %p521_p4 = pnand %p519_p3, %p516_p2 }
  0x2a   :  { %524 = shalt.err (!%p521_p4)
}
  0x2b   :  { %s525_s19 = scalar_lea.vmem %s53_s22, 2048  ;;  %p530_p6 = scmp.lt.s32.totalorder %s53_s22, %s53_s22 }
  0x2c   :  { %p526_p5 = scmp.ne.s32.totalorder %s53_s22, %s525_s19  ;;  %p531_p7 = scmp.lt.s32.totalorder %s525_s19, %s525_s19 }
  0x2e   :  { %p532_p8 = por %p531_p7, %p530_p6 }
  0x30   :  { %p533_p9 = pnand %p532_p8, %p526_p5 }
  0x32   :  { %536 = shalt.err (!%p533_p9)
}
  0x33   :  { %58 = dma.hbm_to_vmem [thread:$0]  %s743_s5, 2048, %s53_s22, [#allocation8], %s590_s15, %s590_s15, %s591_s16  }
  0x34   :  { %581 = dma.done.wait [#allocation5], 128  }
  0x35   :  { %582 = vsyncadd [#allocation5], 4294967168 }
  0x36   :  { %583 = dma.done.wait [#allocation8], 4096  }
  0x37   :  { %584 = vsyncadd [#allocation8], 4294963200  ;;  %v594_v0 = vmov 0.0|0.0   ;;  %vm595_vm0 = vmmov 0   ;;  %v596_v1 = vmov 0.0   ;;  %v72_v2 = vld [vmem:[#allocation7] sm:$0xff]  ;;  %v167_v53 = vstv %s738_s0 }
  0x38   :  { %413 = vmatprep.subr.bf16.mxu0 %v594_v0  ;;  %375 = vmatprep.mubr.msk.f32.mxu0 %vm595_vm0, %v596_v1  ;;  %v73_v3 = vld [vmem:[#allocation7 + $0x8] sm:$0xff]  ;;  %v74_v4 = vld [vmem:[#allocation7 + $0x10] sm:$0xff]  ;;  %v75_v6 = vld [vmem:[#allocation7 + $0x18] sm:$0xff]  ;;  %s597_s24 = smov [#allocation10]  }
  0x39   :  { %437 = vmatprep.subr.bf16.mxu1 %v594_v0  ;;  %410 = vmatprep.mubr.msk.f32.mxu1 %vm595_vm0, %v596_v1  ;;  %v414_v5 = vpack.c.bf16 %v73_v3, %v72_v2  ;;  %v417_v7 = vpack.c.bf16 %v75_v6, %v74_v4  ;;  %v76_v8 = vld [vmem:[#allocation7 + $0x20] sm:$0xff]  ;;  %v77_v9 = vld [vmem:[#allocation7 + $0x28] sm:$0xff]  ;;  %v186_v12 = vld [vmem:[#allocation9 + $0x10] sm:$0xff]  ;;  %s283_s25 = sshll.u32 %s597_s24, 4  ;;  %s284_s25 = int_to_ptr.vmem [resolvable:$true] %s283_s25 }
  0x3a   :  { %v184_v10 = vld [vmem:[#allocation9] sm:$0xff]  ;;  %v185_v11 = vld [vmem:[#allocation9 + $0x8] sm:$0xff]  ;;  %v187_v13 = vld [vmem:[#allocation9 + $0x18] sm:$0xff]  ;;  %v420_v14 = vpack.c.bf16 %v77_v9, %v76_v8  ;;  %p542_p11 = scmp.lt.s32.totalorder %s284_s25, %s284_s25 }
  0x3b   :  { %415 = vmatpush3.bf16.msra.mxu0 %v414_v5  ;;  %v438_v15 = vpack.c.bf16 %v185_v11, %v184_v10  ;;  %v78_v16 = vld [vmem:[#allocation7 + $0x30] sm:$0xff]  ;;  %v79_v17 = vld [vmem:[#allocation7 + $0x38] sm:$0xff]  ;;  %v441_v18 = vpack.c.bf16 %v187_v13, %v186_v12  ;;  %v188_v19 = vld [vmem:[#allocation9 + $0x20] sm:$0xff] }
  0x3c   :  { %416 = vmatprep.subr.bf16.mxu0 %v594_v0  ;;  %v189_v20 = vld [vmem:[#allocation9 + $0x28] sm:$0xff]  ;;  %v423_v21 = vpack.c.bf16 %v79_v17, %v78_v16  ;;  %v80_v22 = vld [vmem:[#allocation7 + $0x40] sm:$0xff]  ;;  %v190_v25 = vld [vmem:[#allocation9 + $0x30] sm:$0xff] }
  0x3d   :  { %439 = vmatpush3.bf16.msra.mxu1 %v438_v15  ;;  %v81_v23 = vld [vmem:[#allocation7 + $0x48] sm:$0xff]  ;;  %v444_v24 = vpack.c.bf16 %v189_v20, %v188_v19  ;;  %v191_v26 = vld [vmem:[#allocation9 + $0x38] sm:$0xff]  ;;  %v82_v28 = vld [vmem:[#allocation7 + $0x50] sm:$0xff] }
  0x3e   :  { %440 = vmatprep.subr.bf16.mxu1 %v594_v0  ;;  %v426_v27 = vpack.c.bf16 %v81_v23, %v80_v22  ;;  %v83_v29 = vld [vmem:[#allocation7 + $0x58] sm:$0xff]  ;;  %v447_v30 = vpack.c.bf16 %v191_v26, %v190_v25  ;;  %v192_v31 = vld [vmem:[#allocation9 + $0x40] sm:$0xff]  ;;  %v193_v32 = vld [vmem:[#allocation9 + $0x48] sm:$0xff] }
  0x3f   :  { %418 = vmatpush3.bf16.msra.mxu0 %v417_v7  ;;  %v429_v33 = vpack.c.bf16 %v83_v29, %v82_v28  ;;  %v84_v34 = vld [vmem:[#allocation7 + $0x60] sm:$0xff]  ;;  %v85_v35 = vld [vmem:[#allocation7 + $0x68] sm:$0xff]  ;;  %v450_v36 = vpack.c.bf16 %v193_v32, %v192_v31  ;;  %v194_v37 = vld [vmem:[#allocation9 + $0x50] sm:$0xff] }
  0x40   :  { %419 = vmatprep.subr.bf16.mxu0 %v594_v0  ;;  %v195_v38 = vld [vmem:[#allocation9 + $0x58] sm:$0xff]  ;;  %v432_v39 = vpack.c.bf16 %v85_v35, %v84_v34  ;;  %v86_v40 = vld [vmem:[#allocation7 + $0x70] sm:$0xff]  ;;  %v196_v45 = vld [vmem:[#allocation9 + $0x60] sm:$0xff] }
  0x41   :  { %442 = vmatpush3.bf16.msra.mxu1 %v441_v18  ;;  %v87_v41 = vld [vmem:[#allocation7 + $0x78] sm:$0xff]  ;;  %v453_v42 = vpack.c.bf16 %v195_v38, %v194_v37  ;;  %v197_v46 = vld [vmem:[#allocation9 + $0x68] sm:$0xff]  ;;  %v198_v48 = vld [vmem:[#allocation9 + $0x70] sm:$0xff] }
  0x42   :  { %443 = vmatprep.subr.bf16.mxu1 %v594_v0  ;;  %v435_v43 = vpack.c.bf16 %v87_v41, %v86_v40  ;;  %v71_v44 = vld [vmem:[#allocation4] sm:$0xff]  ;;  %v456_v47 = vpack.c.bf16 %v197_v46, %v196_v45 }
  0x43   :  { %421 = vmatpush3.bf16.msra.mxu0 %v420_v14  ;;  %v199_v49 = vld [vmem:[#allocation9 + $0x78] sm:$0xff] }
  0x44   :  { %422 = vmatprep.subr.bf16.mxu0 %v594_v0  ;;  %v459_v50 = vpack.c.bf16 %v199_v49, %v198_v48  ;;  %v307_v51 = vld [vmem:[%s741_s3] ss:$0 sm:$0xff]  ;;  %s537_s3 = scalar_lea.vmem %s284_s25, 128 }
  0x45   :  { %445 = vmatpush3.bf16.msra.mxu1 %v444_v24  ;;  %v166_v52 = vld [vmem:[%s742_s4] sm:$0xff]  ;;  %p538_p10 = scmp.ne.s32.totalorder %s284_s25, %s537_s3  ;;  %p543_p12 = scmp.lt.s32.totalorder %s537_s3, %s537_s3 }
  0x46   :  { %446 = vmatprep.subr.bf16.mxu1 %v594_v0  ;;  %v168_v56 = vmul.f32 %v167_v53, %v166_v52 }
  0x47   :  { %424 = vmatpush3.bf16.msra.mxu0 %v423_v21  ;;  %p544_p13 = por %p543_p12, %p542_p11 }
  0x48   :  { %425 = vmatprep.subr.bf16.mxu0 %v594_v0 }
  0x49   :  { %448 = vmatpush3.bf16.msra.mxu1 %v447_v30  ;;  %p545_p0 = pnand %p544_p13, %p538_p10 }
  0x4a   :  { %449 = vmatprep.subr.bf16.mxu1 %v594_v0 }
  0x4b   :  { %427 = vmatpush3.bf16.msra.mxu0 %v426_v27 }
  0x4c   :  { %428 = vmatprep.subr.bf16.mxu0 %v594_v0 }
  0x4d   :  { %451 = vmatpush3.bf16.msra.mxu1 %v450_v36 }
  0x4e   :  { %452 = vmatprep.subr.bf16.mxu1 %v594_v0 }
  0x4f   :  { %430 = vmatpush3.bf16.msra.mxu0 %v429_v33 }
  0x50   :  { %431 = vmatprep.subr.bf16.mxu0 %v594_v0 }
  0x51   :  { %454 = vmatpush3.bf16.msra.mxu1 %v453_v42 }
  0x52   :  { %455 = vmatprep.subr.bf16.mxu1 %v594_v0 }
  0x53   :  { %433 = vmatpush3.bf16.msra.mxu0 %v432_v39 }
  0x54   :  { %434 = vmatprep.subr.bf16.mxu0 %v594_v0 }
  0x55   :  { %457 = vmatpush3.bf16.msra.mxu1 %v456_v47 }
  0x56   :  { %458 = vmatprep.subr.bf16.mxu1 %v594_v0 }
  0x57   :  { %436 = vmatpush3.bf16.msra.mxu0 %v435_v43 }
  0x59   :  { %460 = vmatpush3.bf16.msra.mxu1 %v459_v50 }
  0x5a   :  { %376 = vmatmul.mubr.f32.vlgmr.msra.gmra.mrb[0].mxu0 %v71_v44 }
 0x12d   :  { %v161_v54 = vpop.f32.mrb[0].mxu0 }
 0x12e   :  { %v162_v55 = vadd.f32 %v307_v51, %v161_v54  ;;  %v377_v57 = vpop.f32.mrb[1].mxu0 }
 0x130   :  { %v165_v58 = vmax.f32 %v162_v55, 0.0 }
 0x132   :  { %v169_v59 = vadd.f32 %v168_v56, %v165_v58 }
 0x134   :  { %170 = vst [vmem:[#allocation10] sm:$0xff] %v169_v59  ;;  %411 = vmatmul.mubr.f32.vlgmr.msra.gmra.mrb[0].mxu1 %v169_v59 }
 0x135   :  { %548 = shalt.err (!%p545_p0)
}
 0x136   :  { %s549_s26 = scalar_lea.hbm %s745_s7, 128 }
 0x137   :  { %p550_p1 = scmp.ne.s32.totalorder %s745_s7, %s549_s26  ;;  %p553_p2 = scmp.lt.u32.totalorder %s549_s26, %s745_s7 }
 0x139   :  { %p555_p3 = pnand %p553_p2, %p550_p1 }
 0x13b   :  { %558 = shalt.err (!%p555_p3)
}
 0x13c   :  { %286 = dma.vmem_to_hbm [thread:$0]  %s284_s25, 128, %s745_s7, [#allocation6]   ;;  %v308_v60 = vld [vmem:[%s744_s6] ss:$0 sm:$0xff] }
 0x13d   :  { %s598_s12 = smov [#allocation11]  }
 0x13e   :  { %s293_s13 = sshll.u32 %s598_s12, 4  ;;  %s294_s13 = int_to_ptr.vmem [resolvable:$true] %s293_s13 }
 0x13f   :  { %s559_s14 = scalar_lea.vmem %s294_s13, 128  ;;  %p564_p5 = scmp.lt.s32.totalorder %s294_s13, %s294_s13 }
 0x140   :  { %p560_p4 = scmp.ne.s32.totalorder %s294_s13, %s559_s14  ;;  %p565_p6 = scmp.lt.s32.totalorder %s559_s14, %s559_s14 }
 0x142   :  { %p566_p7 = por %p565_p6, %p564_p5 }
 0x144   :  { %p567_p8 = pnand %p566_p7, %p560_p4 }
 0x207   :  { %v266_v61 = vpop.f32.mrb[0].mxu1 }
 0x208   :  { %v270_v62 = vadd.f32 %v308_v60, %v266_v61  ;;  %v412_v63 = vpop.f32.mrb[1].mxu1 }
 0x20a   :  { %276 = vst [vmem:[#allocation11] sm:$0xff] %v270_v62 }
 0x20b   :  { %570 = shalt.err (!%p567_p8)
}
 0x20c   :  { %s571_s18 = scalar_lea.hbm %s746_s8, 128 }
 0x20d   :  { %p572_p9 = scmp.ne.s32.totalorder %s746_s8, %s571_s18  ;;  %p575_p10 = scmp.lt.u32.totalorder %s571_s18, %s746_s8 }
 0x20f   :  { %p577_p11 = pnand %p575_p10, %p572_p9 }
 0x211   :  { %580 = shalt.err (!%p577_p11)
}
 0x212   :  { %296 = dma.vmem_to_hbm [thread:$0]  %s294_s13, 128, %s746_s8, [#allocation12]  }
 0x213   :  { %585 = dma.done.wait [#allocation6], 128  }
 0x214   :  { %586 = vsyncadd [#allocation6], 4294967168 }
 0x215   :  { %587 = dma.done.wait [#allocation12], 128  }
 0x216   :  { %588 = vsyncadd [#allocation12], 4294967168 }
 0x217   :  { %303 = vsyncpa [#allocation5], 1 }
 0x218   :  { %304 = vsyncpa [#allocation8], 1 }
 0x219   :  { %305 = vsyncpa [#allocation6], 1 }
 0x21a   :  { %306 = vsyncpa [#allocation12], 1 }

</bundles_post_ra>
